<compile_context>
chip_gen: v5e
topology: v5e:2x2
jax: 0.10.0
libtpu: 0.0.40
codegen_flags: <defaults>
</compile_context>

<pallas_src>
import functools
import math

import jax
import jax.numpy as jnp
from jax.experimental import pallas as pl
from jax.experimental.pallas import tpu as pltpu


def _round_up(x, m):
    return (x + m - 1) // m * m


# ---------------------------------------------------------------------------
# Kernel 1: fused Q/K/V projection  y = x @ Wq + bq  applied to three inputs
# ---------------------------------------------------------------------------
def qkv_proj_kernel(xq_ref, xk_ref, xv_ref, w_ref, b_ref, q_ref, k_ref, v_ref):
    w = w_ref[...]                                   # (d_in, tn) resident tile
    b = b_ref[...].astype(jnp.float32)               # (1, tn), added once per tile
    for x_ref, o_ref in ((xq_ref, q_ref), (xk_ref, k_ref), (xv_ref, v_ref)):
        y = jnp.dot(x_ref[...], w, preferred_element_type=jnp.float32) + b
        o_ref[...] = y.astype(o_ref.dtype)


def _pick_tn(d_in, d_out, itemsize, budget=8 * 1024 * 1024):
    """Output-dim tile for the weight so the resident W block stays small."""
    if d_in * d_out * itemsize <= budget or d_out % 128 != 0:
        return d_out
    tn = max(128, (budget // (d_in * itemsize)) // 128 * 128)
    tn = min(tn, d_out)
    while d_out % tn:
        tn -= 128
    return max(tn, 128)


def qkv_proj_pallas(xq, xk, xv, w, b, *, tm=256):
    """xq/xk/xv: (M, d_in); w: (d_in, d_out) (transposed vs nn.Linear); b: (d_out,)."""
    M, d_in = xq.shape
    d_out = w.shape[1]

    in_isz = jnp.dtype(xq.dtype).itemsize
    pack = max(8, 32 // in_isz)                      # 8 f32 / 16 bf16 / 32 int8 sublanes
    tm = min(tm, _round_up(M, pack))
    m_pad = _round_up(M, tm)
    if m_pad != M:
        pad = ((0, m_pad - M), (0, 0))
        xq, xk, xv = (jnp.pad(a, pad) for a in (xq, xk, xv))

    tn = _pick_tn(d_in, d_out, jnp.dtype(w.dtype).itemsize)
    b2d = b.reshape(1, d_out)

    x_spec = pl.BlockSpec((tm, d_in), lambda i, j: (i, 0))
    w_spec = pl.BlockSpec((d_in, tn), lambda i, j: (0, j))
    b_spec = pl.BlockSpec((1, tn), lambda i, j: (0, j))
    o_spec = pl.BlockSpec((tm, tn), lambda i, j: (i, j))

    q, k, v = pl.pallas_call(
        qkv_proj_kernel,
        out_shape=tuple(
            jax.ShapeDtypeStruct((m_pad, d_out), xq.dtype) for _ in range(3)),
        grid_spec=pltpu.PrefetchScalarGridSpec(
            num_scalar_prefetch=0,
            grid=(m_pad // tm, d_out // tn),
            in_specs=[x_spec, x_spec, x_spec, w_spec, b_spec],
            out_specs=(o_spec, o_spec, o_spec),
        ),
        compiler_params=pltpu.CompilerParams(
            dimension_semantics=("parallel", "parallel"),
            vmem_limit_bytes=64 * 1024 * 1024,
        ),
    )(xq, xk, xv, w, b2d)
    if m_pad != M:
        q, k, v = q[:M], k[:M], v[:M]
    return q, k, v


# ---------------------------------------------------------------------------
# Kernel 2: scaled dot-product attention, G (batch,head) pairs x tq queries
# ---------------------------------------------------------------------------
def attn_kernel(q_ref, k_ref, v_ref, o_ref, att_ref, *, scale):
    q = q_ref[...] * scale                           # fold scale into q (cheap)
    k = k_ref[...]
    v = v_ref[...]
    # (G, tq, dh) x (G, S, dh) contracted on last dims -> (G, tq, S); no k.T
    s = jax.lax.dot_general(
        q, k, dimension_numbers=(((2,), (2,)), ((0,), (0,))),
        preferred_element_type=jnp.float32)
    m = jnp.max(s, axis=-1, keepdims=True)
    e = jnp.exp(s - m)
    l = jnp.sum(e, axis=-1, keepdims=True)
    att = e * pl.reciprocal(l, approx=False)         # per-row recip, bcast mul
    out = jax.lax.dot_general(
        att.astype(v.dtype), v,
        dimension_numbers=(((2,), (1,)), ((0,), (0,))),
        preferred_element_type=jnp.float32)
    att_ref[...] = att.astype(att_ref.dtype)
    o_ref[...] = out.astype(o_ref.dtype)


def attn_kernel_masked(mask_ref, q_ref, k_ref, v_ref, o_ref, att_ref, *, scale):
    q = q_ref[...] * scale
    k = k_ref[...]
    v = v_ref[...]
    s = jax.lax.dot_general(
        q, k, dimension_numbers=(((2,), (2,)), ((0,), (0,))),
        preferred_element_type=jnp.float32)
    # matches the torch source exactly: scores += mask * 1e-09
    s = s + mask_ref[...].astype(jnp.float32) * 1e-9
    m = jnp.max(s, axis=-1, keepdims=True)
    e = jnp.exp(s - m)
    l = jnp.sum(e, axis=-1, keepdims=True)
    att = e * pl.reciprocal(l, approx=False)
    out = jax.lax.dot_general(
        att.astype(v.dtype), v,
        dimension_numbers=(((2,), (1,)), ((0,), (0,))),
        preferred_element_type=jnp.float32)
    att_ref[...] = att.astype(att_ref.dtype)
    o_ref[...] = out.astype(o_ref.dtype)


def _pick_tq(S):
    """Query tile: whole S for modest sequences, tile long ones for v7x VMEM."""
    if S <= 1024:
        return S
    for t in (1024, 512, 256, 128):
        if S % t == 0:
            return t
    return S


def _pick_group(BH, S, dh, tq, in_isz, att_isz, budget=36 * 1024 * 1024):
    """Largest divisor of BH whose double-buffered blocks fit the VMEM budget."""
    per_g = 2 * (tq * dh * in_isz          # q block
                 + 2 * S * dh * in_isz     # k + v blocks
                 + tq * dh * in_isz        # out block
                 + tq * S * att_isz)       # att block
    g = int(max(1, min(BH, budget // max(per_g, 1))))
    while BH % g:
        g -= 1
    return g


def scaled_attention_pallas(qh, kh, vh, mask=None, mask_resident=False,
                            att_dtype=jnp.float32):
    """qh/kh/vh: (B*H, S, dh). mask: None, (1,S,S) resident or (B*H,S,S).
    Returns (out, att_W)."""
    BH, S, dh = qh.shape
    scale = 1.0 / math.sqrt(dh)

    tq = _pick_tq(S)
    G = _pick_group(BH, S, dh, tq,
                    jnp.dtype(qh.dtype).itemsize, jnp.dtype(att_dtype).itemsize)

    q_spec = pl.BlockSpec((G, tq, dh), lambda i, j: (i, j, 0))
    kv_spec = pl.BlockSpec((G, S, dh), lambda i, j: (i, 0, 0))
    o_spec = pl.BlockSpec((G, tq, dh), lambda i, j: (i, j, 0))
    att_spec = pl.BlockSpec((G, tq, S), lambda i, j: (i, j, 0))

    if mask is None:
        kernel = functools.partial(attn_kernel, scale=scale)
        in_specs = [q_spec, kv_spec, kv_spec]
        args = (qh, kh, vh)
    else:
        if mask_resident:   # broadcast mask stays resident, DMA'd once
            m_spec = pl.BlockSpec((1, tq, S), lambda i, j: (0, j, 0))
        else:               # per-(batch,head) mask
            m_spec = pl.BlockSpec((G, tq, S), lambda i, j: (i, j, 0))
        kernel = functools.partial(attn_kernel_masked, scale=scale)
        in_specs = [m_spec, q_spec, kv_spec, kv_spec]
        args = (mask, qh, kh, vh)

    out, att = pl.pallas_call(
        kernel,
        out_shape=(
            jax.ShapeDtypeStruct((BH, S, dh), qh.dtype),
            jax.ShapeDtypeStruct((BH, S, S), att_dtype),
        ),
        grid_spec=pltpu.PrefetchScalarGridSpec(
            num_scalar_prefetch=0,
            grid=(BH // G, S // tq),
            in_specs=in_specs,
            out_specs=(o_spec, att_spec),
        ),
        compiler_params=pltpu.CompilerParams(
            dimension_semantics=("parallel", "arbitrary"),
            vmem_limit_bytes=64 * 1024 * 1024,
        ),
    )(*args)
    return out, att


# ---------------------------------------------------------------------------
# Full module forward
# ---------------------------------------------------------------------------
def multi_attention_pallas(Q, K, V, wq, bq, *, num_head, mask=None,
                           att_dtype=jnp.float32):
    """Mirrors Multi_attention.forward (which applies Wq to Q, K and V)."""
    B, S, d_model = Q.shape
    assert d_model % num_head == 0
    dh = d_model // num_head
    M = B * S

    q_p, k_p, v_p = qkv_proj_pallas(
        Q.reshape(M, d_model), K.reshape(M, d_model), V.reshape(M, d_model), wq, bq)

    def split_heads(x):  # (M, d_model) -> (B*H, S, dh)
        return (x.reshape(B, S, num_head, dh)
                 .transpose(0, 2, 1, 3)
                 .reshape(B * num_head, S, dh))

    qh, kh, vh = split_heads(q_p), split_heads(k_p), split_heads(v_p)

    mask_arg, mask_resident = None, False
    if mask is not None:
        m = jnp.asarray(mask)
        lead = m.shape[:-2]
        if all(d == 1 for d in lead):
            # broadcasts over batch AND head -> keep resident, no materialization
            mask_arg, mask_resident = m.reshape(1, S, S), True
        else:
            mask_arg = jnp.broadcast_to(
                m, (B, num_head, S, S)).reshape(B * num_head, S, S)

    out_h, att = scaled_attention_pallas(
        qh, kh, vh, mask=mask_arg, mask_resident=mask_resident, att_dtype=att_dtype)

    att_W = att.reshape(B, num_head, S, S)
    out = (out_h.reshape(B, num_head, S, dh)
                .transpose(0, 2, 1, 3)
                .reshape(B, S, d_model))
    return out, att_W


if __name__ == "__main__":
    key = jax.random.PRNGKey(0)
    kq, kk, kv, kw, kb = jax.random.split(key, 5)

    batch, seq, d_model, num_head = 2, 8, 32, 4
    Q = jax.random.normal(kq, (batch, seq, d_model), jnp.float32)
    K = jax.random.normal(kk, (batch, seq, d_model), jnp.float32)
    V = jax.random.normal(kv, (batch, seq, d_model), jnp.float32)

    # Weight stored (in_features, out_features) so the kernel computes
    # x @ W + b  ==  nn.Linear(x) with weight = W.T.
    lim = 1.0 / math.sqrt(d_model)
    wq = jax.random.uniform(kw, (d_model, d_model), jnp.float32, -lim, lim)
    bq = jax.random.uniform(kb, (d_model,), jnp.float32, -lim, lim)

    # Pure-JAX reference mirroring the torch forward exactly (Wq on Q, K and V).
    def ref_forward(Q, K, V, mask=None):
        dh = d_model // num_head

        def proj(x):
            return x @ wq + bq

        def split(x):
            return x.reshape(batch, seq, num_head, dh).transpose(0, 2, 1, 3)

        q, k, v = split(proj(Q)), split(proj(K)), split(proj(V))
        scores = jnp.einsum("bhqd,bhkd->bhqk", q, k) / math.sqrt(dh)
        if mask is not None:
            scores = scores + mask * 1e-9
        att = jax.nn.softmax(scores, axis=-1)
        o = jnp.einsum("bhqk,bhkd->bhqd", att, v)
        o = o.transpose(0, 2, 1, 3).reshape(batch, seq, d_model)
        return o, att

    # Unmasked path.
    out, att_W = multi_attention_pallas(Q, K, V, wq, bq, num_head=num_head)
    out = jax.block_until_ready(out)
    att_W = jax.block_until_ready(att_W)
    ref_out, ref_att = ref_forward(Q, K, V)
    assert out.shape == (batch, seq, d_model)
    assert att_W.shape == (batch, num_head, seq, seq)
    assert jnp.allclose(out, ref_out, atol=1e-4, rtol=1e-4)
    assert jnp.allclose(att_W, ref_att, atol=1e-4, rtol=1e-4)

    # Masked path (mask broadcasts over batch/head -> resident (1,S,S) block).
    mask = jnp.triu(jnp.full((seq, seq), -1.0, jnp.float32), k=1)
    out_m, att_m = multi_attention_pallas(Q, K, V, wq, bq, num_head=num_head, mask=mask)
    out_m = jax.block_until_ready(out_m)
    att_m = jax.block_until_ready(att_m)
    ref_out_m, ref_att_m = ref_forward(Q, K, V, mask=mask)
    assert jnp.allclose(out_m, ref_out_m, atol=1e-4, rtol=1e-4)
    assert jnp.allclose(att_m, ref_att_m, atol=1e-4, rtol=1e-4)

    print("KERNEL_OK")
</pallas_src>

<mosaic_0001>
module attributes {stable_mosaic.version = 11 : i64} {
  func.func @qkv_proj_kernel(%arg0: i32, %arg1: i32, %arg2: memref<16x32xf32, #tpu.memory_space<vmem>>, %arg3: memref<16x32xf32, #tpu.memory_space<vmem>>, %arg4: memref<16x32xf32, #tpu.memory_space<vmem>>, %arg5: memref<32x32xf32, #tpu.memory_space<vmem>>, %arg6: memref<1x32xf32, #tpu.memory_space<vmem>>, %arg7: memref<16x32xf32, #tpu.memory_space<vmem>>, %arg8: memref<16x32xf32, #tpu.memory_space<vmem>>, %arg9: memref<16x32xf32, #tpu.memory_space<vmem>>) attributes {dimension_semantics = [#tpu.dimension_semantics<parallel>, #tpu.dimension_semantics<parallel>], iteration_bounds = array<i64: 1, 1>, scalar_prefetch = 0 : i64, scratch_operands = 0 : i64, tpu.core_type = #tpu.core_type<tc>, window_params = [{transform_indices = @transform_0, window_bounds = array<i64: 16, 32>}, {transform_indices = @transform_1, window_bounds = array<i64: 16, 32>}, {transform_indices = @transform_2, window_bounds = array<i64: 16, 32>}, {transform_indices = @transform_3, window_bounds = array<i64: 32, 32>}, {transform_indices = @transform_4, window_bounds = array<i64: 1, 32>}, {transform_indices = @transform_5, window_bounds = array<i64: 16, 32>}, {transform_indices = @transform_6, window_bounds = array<i64: 16, 32>}, {transform_indices = @transform_7, window_bounds = array<i64: 16, 32>}]} {
    %c0 = arith.constant 0 : index
    %c0_0 = arith.constant 0 : index
    %0 = vector.load %arg5[%c0, %c0_0] : memref<32x32xf32, #tpu.memory_space<vmem>>, vector<32x32xf32>
    %c0_1 = arith.constant 0 : index
    %c0_2 = arith.constant 0 : index
    %1 = vector.load %arg6[%c0_1, %c0_2] : memref<1x32xf32, #tpu.memory_space<vmem>>, vector<1x32xf32>
    %c0_3 = arith.constant 0 : index
    %c0_4 = arith.constant 0 : index
    %2 = vector.load %arg2[%c0_3, %c0_4] : memref<16x32xf32, #tpu.memory_space<vmem>>, vector<16x32xf32>
    %cst = arith.constant dense<0.000000e+00> : vector<16x32xf32>
    %3 = tpu.matmul %2, %0, %cst {dimension_numbers = #tpu.dot_dimension_numbers<[1], [0], [0], [1], [0, 0, 1, 1], [], []>} : vector<16x32xf32>, vector<32x32xf32>, vector<16x32xf32> -> vector<16x32xf32>
    %4 = vector.broadcast %1 : vector<1x32xf32> to vector<16x32xf32>
    %5 = arith.addf %3, %4 : vector<16x32xf32>
    %c0_5 = arith.constant 0 : index
    %c0_6 = arith.constant 0 : index
    %6 = vector.load %arg7[%c0_5, %c0_6] : memref<16x32xf32, #tpu.memory_space<vmem>>, vector<16x32xf32>
    tpu.vector_store %arg7[%c0_5, %c0_6], %5 {strides = array<i32>} : memref<16x32xf32, #tpu.memory_space<vmem>>, vector<16x32xf32>,
    %c0_7 = arith.constant 0 : index
    %c0_8 = arith.constant 0 : index
    %7 = vector.load %arg3[%c0_7, %c0_8] : memref<16x32xf32, #tpu.memory_space<vmem>>, vector<16x32xf32>
    %cst_9 = arith.constant dense<0.000000e+00> : vector<16x32xf32>
    %8 = tpu.matmul %7, %0, %cst_9 {dimension_numbers = #tpu.dot_dimension_numbers<[1], [0], [0], [1], [0, 0, 1, 1], [], []>} : vector<16x32xf32>, vector<32x32xf32>, vector<16x32xf32> -> vector<16x32xf32>
    %9 = vector.broadcast %1 : vector<1x32xf32> to vector<16x32xf32>
    %10 = arith.addf %8, %9 : vector<16x32xf32>
    %c0_10 = arith.constant 0 : index
    %c0_11 = arith.constant 0 : index
    %11 = vector.load %arg8[%c0_10, %c0_11] : memref<16x32xf32, #tpu.memory_space<vmem>>, vector<16x32xf32>
    tpu.vector_store %arg8[%c0_10, %c0_11], %10 {strides = array<i32>} : memref<16x32xf32, #tpu.memory_space<vmem>>, vector<16x32xf32>,
    %c0_12 = arith.constant 0 : index
    %c0_13 = arith.constant 0 : index
    %12 = vector.load %arg4[%c0_12, %c0_13] : memref<16x32xf32, #tpu.memory_space<vmem>>, vector<16x32xf32>
    %cst_14 = arith.constant dense<0.000000e+00> : vector<16x32xf32>
    %13 = tpu.matmul %12, %0, %cst_14 {dimension_numbers = #tpu.dot_dimension_numbers<[1], [0], [0], [1], [0, 0, 1, 1], [], []>} : vector<16x32xf32>, vector<32x32xf32>, vector<16x32xf32> -> vector<16x32xf32>
    %14 = vector.broadcast %1 : vector<1x32xf32> to vector<16x32xf32>
    %15 = arith.addf %13, %14 : vector<16x32xf32>
    %c0_15 = arith.constant 0 : index
    %c0_16 = arith.constant 0 : index
    %16 = vector.load %arg9[%c0_15, %c0_16] : memref<16x32xf32, #tpu.memory_space<vmem>>, vector<16x32xf32>
    tpu.vector_store %arg9[%c0_15, %c0_16], %15 {strides = array<i32>} : memref<16x32xf32, #tpu.memory_space<vmem>>, vector<16x32xf32>,
    return
  }
  func.func @transform_0(%arg0: i32, %arg1: i32) -> (i32, i32) {
    %c0_i32 = arith.constant 0 : i32
    %c0_i32_0 = arith.constant 0 : i32
    return %arg0, %c0_i32 : i32, i32
  }
  func.func @transform_1(%arg0: i32, %arg1: i32) -> (i32, i32) {
    %c0_i32 = arith.constant 0 : i32
    %c0_i32_0 = arith.constant 0 : i32
    return %arg0, %c0_i32 : i32, i32
  }
  func.func @transform_2(%arg0: i32, %arg1: i32) -> (i32, i32) {
    %c0_i32 = arith.constant 0 : i32
    %c0_i32_0 = arith.constant 0 : i32
    return %arg0, %c0_i32 : i32, i32
  }
  func.func @transform_3(%arg0: i32, %arg1: i32) -> (i32, i32) {
    %c0_i32 = arith.constant 0 : i32
    %c0_i32_0 = arith.constant 0 : i32
    return %c0_i32, %arg1 : i32, i32
  }
  func.func @transform_4(%arg0: i32, %arg1: i32) -> (i32, i32) {
    %c0_i32 = arith.constant 0 : i32
    %c0_i32_0 = arith.constant 0 : i32
    return %c0_i32, %arg1 : i32, i32
  }
  func.func @transform_5(%arg0: i32, %arg1: i32) -> (i32, i32) {
    %c0_i32 = arith.constant 0 : i32
    return %arg0, %arg1 : i32, i32
  }
  func.func @transform_6(%arg0: i32, %arg1: i32) -> (i32, i32) {
    %c0_i32 = arith.constant 0 : i32
    return %arg0, %arg1 : i32, i32
  }
  func.func @transform_7(%arg0: i32, %arg1: i32) -> (i32, i32) {
    %c0_i32 = arith.constant 0 : i32
    return %arg0, %arg1 : i32, i32
  }
}

</mosaic_0001>

<bundles_post_ra>
// kernel: tpu_custom_call.1
= control target key start
LH: loop header
LB: loop body
LE: loop exit
PB: predicated region body
PF: predicated region fallthrough
CT: control target
= control target key end

     0   :  { %13 = vsyncpa [#allocation3], 0  ;;  %s556_s0 = inlined_call_operand.hbm [shape: f32[16,32], index: 0, kind: input, shape index: {}]   ;;  %s557_s1 = inlined_call_operand.hbm [shape: f32[16,32], index: 1, kind: input, shape index: {}]   ;;  %s558_s2 = inlined_call_operand.hbm [shape: f32[16,32], index: 2, kind: input, shape index: {}]   ;;  %s559_s3 = inlined_call_operand.hbm [shape: f32[32,32], index: 3, kind: input, shape index: {}]   ;;  %s560_s4 = inlined_call_operand.vmem [shape: f32[1,32], index: 4, kind: input, shape index: {}]   ;;  %s561_s5 = inlined_call_operand.hbm [shape: f32[16,32], index: 5, kind: output, shape index: {0}]   ;;  %s562_s6 = inlined_call_operand.hbm [shape: f32[16,32], index: 6, kind: output, shape index: {1}]   ;;  %s563_s7 = inlined_call_operand.hbm [shape: f32[16,32], index: 7, kind: output, shape index: {2}]  }
   0x1   :  { %14 = vsyncpa [#allocation6], 0 }
   0x2   :  { %15 = vsyncpa [#allocation9], 0 }
   0x3   :  { %16 = vsyncpa [#allocation4], 0 }
   0x4   :  { %17 = vsyncpa [#allocation12], 0  ;;  %s35_s26 = sshll.u32 %s557_s1, 4  ;;  %s450_s27 = smov [#allocation5]   ;;  %s36_s26 = int_to_ptr.hbm [resolvable:$true] %s35_s26 }
   0x5   :  { %s37_s28 = sshll.u32 %s450_s27, 4  ;;  %s22_s8 = sshll.u32 %s556_s0, 4  ;;  %s38_s28 = int_to_ptr.vmem [resolvable:$true] %s37_s28  ;;  %s23_s8 = int_to_ptr.hbm [resolvable:$true] %s22_s8 }
   0x6   :  { %s451_s9 = smov 128   ;;  %s452_s10 = smov 8  }
   0x7   :  { %43 = dma.hbm_to_vmem [thread:$0]  %s36_s26, 256, %s38_s28, [#allocation6], %s451_s9, %s451_s9, %s452_s10  }
   0x8   :  { %s453_s11 = smov [#allocation2]   ;;  %s48_s1 = sshll.u32 %s558_s2, 4  ;;  %s49_s1 = int_to_ptr.hbm [resolvable:$true] %s48_s1 }
   0x9   :  { %s24_s12 = sshll.u32 %s453_s11, 4  ;;  %s61_s16 = sshll.u32 %s559_s3, 4  ;;  %s25_s12 = int_to_ptr.vmem [resolvable:$true] %s24_s12  ;;  %s62_s16 = int_to_ptr.hbm [resolvable:$true] %s61_s16 }
   0xa   :  { %30 = dma.hbm_to_vmem [thread:$0]  %s23_s8, 256, %s25_s12, [#allocation3], %s451_s9, %s451_s9, %s452_s10  }
   0xb   :  { %s454_s17 = smov [#allocation7]   ;;  %s455_s19 = smov [#allocation8]  }
   0xc   :  { %s50_s18 = sshll.u32 %s454_s17, 4  ;;  %s63_s2 = sshll.u32 %s455_s19, 4  ;;  %s51_s18 = int_to_ptr.vmem [resolvable:$true] %s50_s18  ;;  %s64_s2 = int_to_ptr.vmem [resolvable:$true] %s63_s2 }
   0xd   :  { %56 = dma.hbm_to_vmem [thread:$0]  %s49_s1, 256, %s51_s18, [#allocation6], %s451_s9, %s451_s9, %s452_s10  }
   0xe   :  { %69 = dma.hbm_to_vmem [thread:$0]  %s62_s16, 512, %s64_s2, [#allocation9], %s451_s9, %s451_s9, %s452_s10  }
   0xf   :  { %440 = dma.done.wait [#allocation3], 256  }
  0x10   :  { %441 = vsyncadd [#allocation3], 4294967040 }
  0x11   :  { %442 = dma.done.wait [#allocation6], 512  }
  0x12   :  { %443 = vsyncadd [#allocation6], 4294966784 }
  0x13   :  { %444 = dma.done.wait [#allocation9], 512  }
  0x14   :  { %445 = vsyncadd [#allocation9], 4294966784  ;;  %v91_v0 = vld [vmem:[#allocation8 + $0x18] sm:$0xff]  ;;  %v90_v1 = vld [vmem:[#allocation8 + $0x10] sm:$0xff]  ;;  %vm98_vm0 = vcmask 261120   ;;  %s456_s21 = smov [#allocation11]  }
  0x15   :  { %183 = vmatpush.msra.mxu2 %v91_v0  ;;  %150 = vmatpush.msra.mxu1 %v91_v0  ;;  %v89_v2 = vld [vmem:[#allocation8 + $0x8] sm:$0xff]  ;;  %v88_v3 = vld [vmem:[#allocation8] sm:$0xff]  ;;  %v163_v4 = vld [vmem:[#allocation7] sm:$0xff]  ;;  %s213_s22 = sshll.u32 %s456_s21, 4  ;;  %s215_s25 = sshll.u32 %s562_s6, 4  ;;  %s214_s22 = int_to_ptr.vmem [resolvable:$true] %s213_s22  ;;  %s216_s25 = int_to_ptr.hbm [resolvable:$true] %s215_s25 }
  0x16   :  { %258 = vmatpush.msra.mxu3 %v91_v0  ;;  %117 = vmatpush.msra.mxu0 %v91_v0  ;;  %v130_v5 = vld [vmem:[#allocation5] sm:$0xff]  ;;  %v94_v6 = vld [vmem:[#allocation2 + $0x8] sm:$0xff]  ;;  %v93_v7 = vld [vmem:[#allocation2] sm:$0xff]  ;;  %s457_s26 = smov [#allocation10]   ;;  %s202_s29 = sshll.u32 %s561_s5, 4  ;;  %s203_s29 = int_to_ptr.hbm [resolvable:$true] %s202_s29 }
  0x17   :  { %184 = vmatpush.msra.mxu2 %v90_v1  ;;  %151 = vmatpush.msra.mxu1 %v90_v1  ;;  %v164_v8 = vld [vmem:[#allocation7 + $0x8] sm:$0xff]  ;;  %v131_v9 = vld [vmem:[#allocation5 + $0x8] sm:$0xff]  ;;  %v271_v10 = vld [vmem:[%s560_s4] ss:$0 sm:$0xff]  ;;  %s200_s27 = sshll.u32 %s457_s26, 4  ;;  %s458_s6 = smov [#allocation13]   ;;  %s201_s27 = int_to_ptr.vmem [resolvable:$true] %s200_s27 }
  0x18   :  { %259 = vmatpush.msra.mxu3 %v90_v1  ;;  %118 = vmatpush.msra.mxu0 %v90_v1  ;;  %s226_s30 = sshll.u32 %s458_s6, 4  ;;  %s228_s12 = sshll.u32 %s563_s7, 4  ;;  %s227_s30 = int_to_ptr.vmem [resolvable:$true] %s226_s30  ;;  %s229_s12 = int_to_ptr.hbm [resolvable:$true] %s228_s12 }
  0x19   :  { %185 = vmatpush.msra.mxu2 %v89_v2  ;;  %152 = vmatpush.msra.mxu1 %v89_v2 }
  0x1a   :  { %260 = vmatpush.msra.mxu3 %v89_v2  ;;  %119 = vmatpush.msra.mxu0 %v89_v2 }
  0x1b   :  { %186 = vmatpush.msra.mxu2 %v88_v3  ;;  %153 = vmatpush.msra.mxu1 %v88_v3 }
  0x1c   :  { %256 = vmatmul.msk.f32.vlgmr.msra.gmra.mxu2 %vm98_vm0, %v163_v4  ;;  %254 = vmatmul.msk.f32.vlgmr.msra.gmra.mxu1 %vm98_vm0, %v130_v5 }
  0x1d   :  { %261 = vmatpush.msra.mxu3 %v88_v3  ;;  %120 = vmatpush.msra.mxu0 %v88_v3 }
  0x1e   :  { %253 = vmatmul.msk.f32.vlgmr.msra.gmra.mxu3 %vm98_vm0, %v94_v6  ;;  %252 = vmatmul.msk.f32.vlgmr.msra.gmra.mxu0 %vm98_vm0, %v93_v7 }
  0x24   :  { %257 = vmatmul.msk.f32.gmra.mxu2 %vm98_vm0, %v164_v8  ;;  %255 = vmatmul.msk.f32.gmra.mxu1 %vm98_vm0, %v131_v9 }
  0x99   :  { %v155_v11 = vpop.f32.mrf.mxu1 }
  0x9a   :  { %v156_v12 = vadd.f32 %v271_v10, %v155_v11 }
  0x9b   :  { %v122_v13 = vpop.f32.mrf.mxu0 }
  0x9c   :  { %161 = vst.msk [vmem:[#allocation11] sm:$0xff] %vm98_vm0, %v156_v12  ;;  %v123_v14 = vadd.f32 %v271_v10, %v122_v13 }
  0x9e   :  { %128 = vst.msk [vmem:[#allocation10] sm:$0xff] %vm98_vm0, %v123_v14 }
  0x9f   :  { %v188_v15 = vpop.f32.mrf.mxu2 }
  0xa0   :  { %v189_v16 = vadd.f32 %v271_v10, %v188_v15 }
  0xa1   :  { %v158_v17 = vpop.f32.mrf.mxu1  ;;  %v125_v18 = vpop.f32.mrf.mxu3 }
  0xa2   :  { %194 = vst.msk [vmem:[#allocation13] sm:$0xff] %vm98_vm0, %v189_v16  ;;  %v159_v19 = vadd.f32 %v271_v10, %v158_v17  ;;  %v126_v20 = vadd.f32 %v271_v10, %v125_v18 }
  0xa4   :  { %162 = vst.msk [vmem:[#allocation11 + $0x8] sm:$0xff] %vm98_vm0, %v159_v19 }
  0xa5   :  { %129 = vst.msk [vmem:[#allocation10 + $0x8] sm:$0xff] %vm98_vm0, %v126_v20  ;;  %221 = dma.vmem_to_hbm [thread:$0]  %s214_s22, 256, %s216_s25, [#allocation12], %s451_s9, %s451_s9, %s452_s10  }
  0xa6   :  { %208 = dma.vmem_to_hbm [thread:$0]  %s201_s27, 256, %s203_s29, [#allocation4], %s451_s9, %s451_s9, %s452_s10  }
  0xa7   :  { %v191_v21 = vpop.f32.mrf.mxu2 }
  0xa8   :  { %v192_v22 = vadd.f32 %v271_v10, %v191_v21 }
  0xaa   :  { %195 = vst.msk [vmem:[#allocation13 + $0x8] sm:$0xff] %vm98_vm0, %v192_v22 }
  0xab   :  { %234 = dma.vmem_to_hbm [thread:$0]  %s227_s30, 256, %s229_s12, [#allocation12], %s451_s9, %s451_s9, %s452_s10  }
  0xac   :  { %446 = dma.done.wait [#allocation4], 256  }
  0xad   :  { %447 = vsyncadd [#allocation4], 4294967040 }
  0xae   :  { %448 = dma.done.wait [#allocation12], 512  }
  0xaf   :  { %449 = vsyncadd [#allocation12], 4294966784 }
  0xb0   :  { %247 = vsyncpa [#allocation3], 1 }
  0xb1   :  { %248 = vsyncpa [#allocation6], 1 }
  0xb2   :  { %249 = vsyncpa [#allocation9], 1 }
  0xb3   :  { %250 = vsyncpa [#allocation4], 1 }
  0xb4   :  { %251 = vsyncpa [#allocation12], 1 }

</bundles_post_ra>
